<compile_context>
chip_gen: v7x
topology: tpu7x:2x2x1
jax: 0.10.0
libtpu: 0.0.40
codegen_flags: <defaults>
</compile_context>

<pallas_src>
import functools

import jax
import jax.numpy as jnp
from jax.experimental import pallas as pl
from jax.experimental.pallas import tpu as pltpu


FILTERS_IN = 2
STRIDE = 4
KSIZES = (32, 26, 18)          # branch kernel sizes (padding = K // 2 each)
KMAX = 32                      # branch-1 window; branches 2/3 are subsets
NSHIFT = KMAX // STRIDE        # 8 lane-shift taps per deinterleaved phase
C4 = FILTERS_IN * STRIDE       # 8 deinterleaved input rows, ordered (c, r)
CK = FILTERS_IN * KMAX         # 64 fused-conv contraction size
HALO = 128                     # lane-aligned halo (only NSHIFT-1 = 7 cols needed)
BN_EPS = 1e-5                  # PyTorch BatchNorm1d default


# ----------------------------- Pallas kernel ------------------------------ #
def _msc_kernel(xt_ref, w1_ref, b1_ref, w2_ref, b2_ref, out_ref, *, tile_l):
    # xt_ref:  (1, 1, C4, tile_l + HALO)  stride-deinterleaved input slab + halo
    # w1_ref:  (3F, CK)   fused, BN1-folded strided-conv weights, cols = (q,c,r)
    # b1_ref:  (3F, 1)
    # w2_ref:  (3F, 3F)   block-diagonal, BN2-folded 1x1 conv
    # b2_ref:  (3F, 1)
    # out_ref: (1, 3F, tile_l)
    slab = xt_ref[0, 0]                                      # (C4, tile_l+HALO)
    # Build the im2col patch block in VMEM from 8 static lane shifts:
    #   patch[q*C4 + c*4 + r, i] = x_pad[c, 4*(i0+i) + 4q + r]
    patch = jnp.concatenate(
        [slab[:, q:q + tile_l] for q in range(NSHIFT)], axis=0)   # (CK, tile_l)
    y = jnp.dot(w1_ref[...], patch, preferred_element_type=jnp.float32)
    y = jnp.maximum(y + b1_ref[...], 0.0)                    # QuantReLU ~ ReLU
    z = jnp.dot(w2_ref[...], y, preferred_element_type=jnp.float32)
    out_ref[0] = (z + b2_ref[...]).astype(out_ref.dtype)


# ------------------------------ JAX glue ---------------------------------- #
def _round_up(n, m):
    return ((n + m - 1) // m) * m


def _cdiv(a, b):
    return -(-a // b)


def _conv_out_len(L, K, stride, pad):
    return (L + 2 * pad - K) // stride + 1


def _fuse_params(params):
    """Fold BN into weights and fuse the three branches into one weight set."""
    w1_list, b1_list, w2_blocks, b2_list = [], [], [], []
    F_ref = None
    for name, K in zip(("branch1", "branch2", "branch3"), KSIZES):
        p = params[name]
        F = p["w1"].shape[0]
        if F_ref is None:
            F_ref = F
        assert F == F_ref, "all branches must have output_filters // 3 filters"

        # conv1 + BN1 fold:  BN(conv(x) + b) = (s*W) x + (s*b + t)
        s1 = p["bn1_g"] / jnp.sqrt(p["bn1_v"] + BN_EPS)
        w1 = p["w1"].astype(jnp.float32) * s1[:, None, None]        # (F, C, K)
        b1 = p["b1"] * s1 + (p["bn1_b"] - p["bn1_m"] * s1)          # (F,)

        # place this branch's K taps centered inside the common KMAX window
        off = (KMAX - K) // 2
        w1_full = jnp.zeros((F, FILTERS_IN, KMAX), jnp.float32)
        w1_full = w1_full.at[:, :, off:off + K].set(w1)
        w1_list.append(w1_full)
        b1_list.append(b1.astype(jnp.float32))

        # 1x1 conv + BN2 fold
        s2 = p["bn2_g"] / jnp.sqrt(p["bn2_v"] + BN_EPS)
        w2 = p["w2"].reshape(F, F).astype(jnp.float32) * s2[:, None]
        b2 = p["b2"] * s2 + (p["bn2_b"] - p["bn2_m"] * s2)
        w2_blocks.append(w2)
        b2_list.append(b2.astype(jnp.float32))

    w1f = jnp.concatenate(w1_list, axis=0)                   # (3F, C, KMAX)
    F3 = w1f.shape[0]
    # Permute columns k = 4q + r -> (q, c, r) to match the in-kernel patch
    # row order built from the stride-deinterleaved slab.
    w1p = (w1f.reshape(F3, FILTERS_IN, NSHIFT, STRIDE)
               .transpose(0, 2, 1, 3)
               .reshape(F3, CK))
    b1f = jnp.concatenate(b1_list)[:, None]                  # (3F, 1)
    w2f = jax.scipy.linalg.block_diag(*w2_blocks)            # (3F, 3F)
    b2f = jnp.concatenate(b2_list)[:, None]                  # (3F, 1)
    return w1p, b1f, w2f, b2f


def _choose_tiling(N, L_out, target_tile_l):
    """Lane-dense tiles: multiple of 128, low pad waste, >=2 tiles when N==1."""
    l128 = _round_up(max(L_out, 1), 128)
    n_tiles = max(1, _cdiv(l128, target_tile_l))
    if N == 1 and n_tiles == 1 and l128 >= 256:
        n_tiles = 2                       # give both v7x TensorCores work
    tile_l = _round_up(_cdiv(l128, n_tiles), 128)
    return tile_l, n_tiles


def msc_layer_forward(x, params, *, target_tile_l=4096):
    N, C, L = x.shape
    assert C == FILTERS_IN, "MSCLayer expects 2 input channels"

    # Derive L_out from the conv formula for every branch (not L//4+1 folklore)
    louts = [_conv_out_len(L, K, STRIDE, K // 2) for K in KSIZES]
    assert len(set(louts)) == 1, f"branch output lengths differ: {louts}"
    L_out = louts[0]

    w1p, b1f, w2f, b2f = _fuse_params(params)
    F3 = w1p.shape[0]

    tile_l, n_tiles = _choose_tiling(N, L_out, target_tile_l)
    l_pad = n_tiles * tile_l

    # --- gather-free stride-deinterleaved input (replaces the 8x im2col) ----
    pad = KMAX // 2
    Lq = l_pad + HALO                              # deinterleaved length + halo
    x_pad = jnp.pad(x.astype(jnp.float32),
                    ((0, 0), (0, 0), (pad, STRIDE * Lq - L - pad)))
    # xd[n, c*4 + r, j] = x_pad[n, c, 4*j + r]
    xd = (x_pad.reshape(N, C, Lq, STRIDE)
               .transpose(0, 1, 3, 2)
               .reshape(N, C4, Lq))
    main = xd[:, :, :l_pad].reshape(N, C4, n_tiles, tile_l)
    halo_src = xd[:, :, tile_l:]                   # (N, C4, (n_tiles-1)*tile_l + HALO)
    halo_src = jnp.pad(halo_src,
                       ((0, 0), (0, 0), (0, l_pad - halo_src.shape[-1])))
    halo = halo_src.reshape(N, C4, n_tiles, tile_l)[..., :HALO]
    # xt[n, t, :, :] = xd[n, :, t*tile_l : t*tile_l + tile_l + HALO]
    xt = jnp.concatenate([main, halo], axis=-1).transpose(0, 2, 1, 3)
    # xt: (N, n_tiles, C4, tile_l + HALO)

    flops = 2 * N * n_tiles * tile_l * (F3 * CK + F3 * F3)
    bytes_accessed = 4 * (xt.size + N * F3 * l_pad
                          + w1p.size + b1f.size + w2f.size + b2f.size)

    kernel = functools.partial(_msc_kernel, tile_l=tile_l)
    out = pl.pallas_call(
        kernel,
        out_shape=jax.ShapeDtypeStruct((N, F3, l_pad), jnp.float32),
        grid_spec=pltpu.PrefetchScalarGridSpec(
            num_scalar_prefetch=0,
            grid=(N, n_tiles),
            in_specs=[
                pl.BlockSpec((1, 1, C4, tile_l + HALO),
                             lambda n, t: (n, t, 0, 0)),              # input slab
                pl.BlockSpec((F3, CK), lambda n, t: (0, 0)),          # W1 (resident)
                pl.BlockSpec((F3, 1), lambda n, t: (0, 0)),           # b1
                pl.BlockSpec((F3, F3), lambda n, t: (0, 0)),          # W2 (resident)
                pl.BlockSpec((F3, 1), lambda n, t: (0, 0)),           # b2
            ],
            out_specs=pl.BlockSpec((1, F3, tile_l), lambda n, t: (n, 0, t)),
        ),
        compiler_params=pltpu.CompilerParams(
            dimension_semantics=("parallel", "parallel"),
            vmem_limit_bytes=32 * 1024 * 1024,
        ),
        cost_estimate=pl.CostEstimate(flops=flops, transcendentals=0,
                                      bytes_accessed=bytes_accessed),
    )(xt, w1p, b1f, w2f, b2f)

    # Output is already NCL; just drop the lane padding.  Channel order is
    # [branch1 | branch2 | branch3], matching torch.cat(outputs, 1).
    return out[:, :, :L_out]


# --------------------------- pure-JAX reference ---------------------------- #
def _ref_branch(x, p, K, stride, padding):
    hi = jax.lax.Precision.HIGHEST
    y = jax.lax.conv_general_dilated(
        x, p["w1"], window_strides=(stride,), padding=[(padding, padding)],
        dimension_numbers=("NCH", "OIH", "NCH"), precision=hi)
    y = y + p["b1"][None, :, None]
    s1 = p["bn1_g"] / jnp.sqrt(p["bn1_v"] + BN_EPS)
    y = y * s1[None, :, None] + (p["bn1_b"] - p["bn1_m"] * s1)[None, :, None]
    y = jnp.maximum(y, 0.0)
    z = jax.lax.conv_general_dilated(
        y, p["w2"], window_strides=(1,), padding=[(0, 0)],
        dimension_numbers=("NCH", "OIH", "NCH"), precision=hi)
    z = z + p["b2"][None, :, None]
    s2 = p["bn2_g"] / jnp.sqrt(p["bn2_v"] + BN_EPS)
    return z * s2[None, :, None] + (p["bn2_b"] - p["bn2_m"] * s2)[None, :, None]


def msc_layer_reference(x, params):
    outs = [_ref_branch(x, params[n], K, STRIDE, K // 2)
            for n, K in zip(("branch1", "branch2", "branch3"), KSIZES)]
    return jnp.concatenate(outs, axis=1)


# --------------------------- parameter init -------------------------------- #
def init_branch_params(key, filters_in, F, ksize):
    k1, k2, k3, k4, k5, k6, k7, k8 = jax.random.split(key, 8)
    return dict(
        w1=0.1 * jax.random.normal(k1, (F, filters_in, ksize), jnp.float32),
        b1=0.1 * jax.random.normal(k2, (F,), jnp.float32),
        bn1_g=1.0 + 0.1 * jax.random.normal(k3, (F,), jnp.float32),
        bn1_b=0.1 * jax.random.normal(k4, (F,), jnp.float32),
        bn1_m=jnp.zeros((F,), jnp.float32),
        bn1_v=jnp.ones((F,), jnp.float32),
        w2=0.1 * jax.random.normal(k5, (F, F, 1), jnp.float32),
        b2=0.1 * jax.random.normal(k6, (F,), jnp.float32),
        bn2_g=1.0 + 0.1 * jax.random.normal(k7, (F,), jnp.float32),
        bn2_b=0.1 * jax.random.normal(k8, (F,), jnp.float32),
        bn2_m=jnp.zeros((F,), jnp.float32),
        bn2_v=jnp.ones((F,), jnp.float32),
    )


def init_msc_params(key, output_filters):
    assert output_filters % 3 == 0, "output_filters must be divisible by 3"
    F = output_filters // 3
    kb1, kb2, kb3 = jax.random.split(key, 3)
    return dict(
        branch1=init_branch_params(kb1, FILTERS_IN, F, 32),
        branch2=init_branch_params(kb2, FILTERS_IN, F, 26),
        branch3=init_branch_params(kb3, FILTERS_IN, F, 18),
    )


if __name__ == "__main__":
    key = jax.random.PRNGKey(0)
    kx, kp, kx2 = jax.random.split(key, 3)

    # Case 1: module-like small shapes — batch=2, in_channels=2 (fixed by the
    # module), seq=64, output_filters=24 -> 8 filters per branch.
    N, C_in, L = 2, 2, 64
    output_filters = 24
    x = jax.random.normal(kx, (N, C_in, L), jnp.float32)
    params = init_msc_params(kp, output_filters)

    fwd = jax.jit(msc_layer_forward)
    ref_fn = jax.jit(msc_layer_reference)

    out = jax.block_until_ready(fwd(x, params))
    L_out = (L + 2 * (KMAX // 2) - KMAX) // STRIDE + 1
    assert out.shape == (N, output_filters, L_out), out.shape
    assert bool(jnp.all(jnp.isfinite(out)))

    # Validate BN-folding + branch fusion + in-kernel patch build against an
    # unfused pure-JAX reference.
    ref = jax.block_until_ready(ref_fn(x, params))
    assert bool(jnp.allclose(out, ref, rtol=5e-3, atol=5e-3)), float(
        jnp.max(jnp.abs(out - ref)))

    # Case 2: N=1, longer sequence — exercises the multi-tile path, the
    # 128-lane halo across tile boundaries, and the "split lane axis when
    # N==1" megacore rule.
    x2 = jax.random.normal(kx2, (1, C_in, 1600), jnp.float32)
    out2 = jax.block_until_ready(fwd(x2, params))
    ref2 = jax.block_until_ready(ref_fn(x2, params))
    assert out2.shape == ref2.shape, (out2.shape, ref2.shape)
    assert bool(jnp.allclose(out2, ref2, rtol=5e-3, atol=5e-3)), float(
        jnp.max(jnp.abs(out2 - ref2)))

    print("KERNEL_OK")
</pallas_src>

<mosaic_0001>
module attributes {stable_mosaic.version = 11 : i64} {
  func.func @_msc_kernel(%arg0: i32, %arg1: i32, %arg2: memref<1x1x8x256xf32, #tpu.memory_space<vmem>>, %arg3: memref<24x64xf32, #tpu.memory_space<vmem>>, %arg4: memref<24x1xf32, #tpu.memory_space<vmem>>, %arg5: memref<24x24xf32, #tpu.memory_space<vmem>>, %arg6: memref<24x1xf32, #tpu.memory_space<vmem>>, %arg7: memref<1x24x128xf32, #tpu.memory_space<vmem>>) attributes {dimension_semantics = [#tpu.dimension_semantics<parallel>, #tpu.dimension_semantics<parallel>], iteration_bounds = array<i64: 2, 1>, scalar_prefetch = 0 : i64, scratch_operands = 0 : i64, tpu.core_type = #tpu.core_type<tc>, window_params = [{transform_indices = @transform_0, window_bounds = array<i64: 1, 1, 8, 256>}, {pipeline_mode = #tpu.pipeline_mode<synchronous>, transform_indices = @transform_1, window_bounds = array<i64: 24, 64>}, {pipeline_mode = #tpu.pipeline_mode<synchronous>, transform_indices = @transform_2, window_bounds = array<i64: 24, 1>}, {pipeline_mode = #tpu.pipeline_mode<synchronous>, transform_indices = @transform_3, window_bounds = array<i64: 24, 24>}, {pipeline_mode = #tpu.pipeline_mode<synchronous>, transform_indices = @transform_4, window_bounds = array<i64: 24, 1>}, {transform_indices = @transform_5, window_bounds = array<i64: 1, 24, 128>}]} {
    %c0 = arith.constant 0 : index
    %c0_0 = arith.constant 0 : index
    %c0_1 = arith.constant 0 : index
    %c0_2 = arith.constant 0 : index
    %0 = vector.load %arg2[%c0, %c0_0, %c0_1, %c0_2] : memref<1x1x8x256xf32, #tpu.memory_space<vmem>>, vector<1x1x8x256xf32>
    %1 = vector.shape_cast %0 : vector<1x1x8x256xf32> to vector<8x256xf32>
    %2 = vector.extract_strided_slice %1 {offsets = [0, 0], sizes = [8, 128], strides = [1, 1]} : vector<8x256xf32> to vector<8x128xf32>
    %3 = vector.extract_strided_slice %1 {offsets = [0, 1], sizes = [8, 128], strides = [1, 1]} : vector<8x256xf32> to vector<8x128xf32>
    %4 = vector.extract_strided_slice %1 {offsets = [0, 2], sizes = [8, 128], strides = [1, 1]} : vector<8x256xf32> to vector<8x128xf32>
    %5 = vector.extract_strided_slice %1 {offsets = [0, 3], sizes = [8, 128], strides = [1, 1]} : vector<8x256xf32> to vector<8x128xf32>
    %6 = vector.extract_strided_slice %1 {offsets = [0, 4], sizes = [8, 128], strides = [1, 1]} : vector<8x256xf32> to vector<8x128xf32>
    %7 = vector.extract_strided_slice %1 {offsets = [0, 5], sizes = [8, 128], strides = [1, 1]} : vector<8x256xf32> to vector<8x128xf32>
    %8 = vector.extract_strided_slice %1 {offsets = [0, 6], sizes = [8, 128], strides = [1, 1]} : vector<8x256xf32> to vector<8x128xf32>
    %9 = vector.extract_strided_slice %1 {offsets = [0, 7], sizes = [8, 128], strides = [1, 1]} : vector<8x256xf32> to vector<8x128xf32>
    %10 = tpu.concatenate %2, %3, %4, %5, %6, %7, %8, %9 in 0 : vector<8x128xf32>, vector<8x128xf32>, vector<8x128xf32>, vector<8x128xf32>, vector<8x128xf32>, vector<8x128xf32>, vector<8x128xf32>, vector<8x128xf32> -> vector<64x128xf32>
    %c0_3 = arith.constant 0 : index
    %c0_4 = arith.constant 0 : index
    %11 = vector.load %arg3[%c0_3, %c0_4] : memref<24x64xf32, #tpu.memory_space<vmem>>, vector<24x64xf32>
    %cst = arith.constant dense<0.000000e+00> : vector<24x128xf32>
    %12 = tpu.matmul %11, %10, %cst {dimension_numbers = #tpu.dot_dimension_numbers<[1], [0], [0], [1], [0, 0, 1, 1], [], []>} : vector<24x64xf32>, vector<64x128xf32>, vector<24x128xf32> -> vector<24x128xf32>
    %c0_5 = arith.constant 0 : index
    %c0_6 = arith.constant 0 : index
    %13 = vector.load %arg4[%c0_5, %c0_6] : memref<24x1xf32, #tpu.memory_space<vmem>>, vector<24x1xf32>
    %14 = vector.broadcast %13 : vector<24x1xf32> to vector<24x128xf32>
    %15 = arith.addf %12, %14 : vector<24x128xf32>
    %cst_7 = arith.constant 0.000000e+00 : f32
    %16 = vector.broadcast %cst_7 : f32 to vector<24x128xf32>
    %17 = arith.maximumf %15, %16 : vector<24x128xf32>
    %c0_8 = arith.constant 0 : index
    %c0_9 = arith.constant 0 : index
    %18 = vector.load %arg5[%c0_8, %c0_9] : memref<24x24xf32, #tpu.memory_space<vmem>>, vector<24x24xf32>
    %cst_10 = arith.constant dense<0.000000e+00> : vector<24x128xf32>
    %19 = tpu.matmul %18, %17, %cst_10 {dimension_numbers = #tpu.dot_dimension_numbers<[1], [0], [0], [1], [0, 0, 1, 1], [], []>} : vector<24x24xf32>, vector<24x128xf32>, vector<24x128xf32> -> vector<24x128xf32>
    %c0_11 = arith.constant 0 : index
    %c0_12 = arith.constant 0 : index
    %20 = vector.load %arg6[%c0_11, %c0_12] : memref<24x1xf32, #tpu.memory_space<vmem>>, vector<24x1xf32>
    %21 = vector.broadcast %20 : vector<24x1xf32> to vector<24x128xf32>
    %22 = arith.addf %19, %21 : vector<24x128xf32>
    %c0_13 = arith.constant 0 : index
    %c0_14 = arith.constant 0 : index
    %c0_15 = arith.constant 0 : index
    %23 = vector.load %arg7[%c0_13, %c0_14, %c0_15] : memref<1x24x128xf32, #tpu.memory_space<vmem>>, vector<1x24x128xf32>
    %24 = vector.shape_cast %23 : vector<1x24x128xf32> to vector<24x128xf32>
    %25 = vector.shape_cast %22 : vector<24x128xf32> to vector<1x24x128xf32>
    tpu.vector_store %arg7[%c0_13, %c0_14, %c0_15], %25 {strides = array<i32>} : memref<1x24x128xf32, #tpu.memory_space<vmem>>, vector<1x24x128xf32>,
    return
  }
  func.func @transform_0(%arg0: i32, %arg1: i32) -> (i32, i32, i32, i32) {
    %c0_i32 = arith.constant 0 : i32
    %c0_i32_0 = arith.constant 0 : i32
    %c0_i32_1 = arith.constant 0 : i32
    return %arg0, %arg1, %c0_i32, %c0_i32_0 : i32, i32, i32, i32
  }
  func.func @transform_1(%arg0: i32, %arg1: i32) -> (i32, i32) {
    %c0_i32 = arith.constant 0 : i32
    %c0_i32_0 = arith.constant 0 : i32
    %c0_i32_1 = arith.constant 0 : i32
    return %c0_i32, %c0_i32_0 : i32, i32
  }
  func.func @transform_2(%arg0: i32, %arg1: i32) -> (i32, i32) {
    %c0_i32 = arith.constant 0 : i32
    %c0_i32_0 = arith.constant 0 : i32
    %c0_i32_1 = arith.constant 0 : i32
    return %c0_i32, %c0_i32_0 : i32, i32
  }
  func.func @transform_3(%arg0: i32, %arg1: i32) -> (i32, i32) {
    %c0_i32 = arith.constant 0 : i32
    %c0_i32_0 = arith.constant 0 : i32
    %c0_i32_1 = arith.constant 0 : i32
    return %c0_i32, %c0_i32_0 : i32, i32
  }
  func.func @transform_4(%arg0: i32, %arg1: i32) -> (i32, i32) {
    %c0_i32 = arith.constant 0 : i32
    %c0_i32_0 = arith.constant 0 : i32
    %c0_i32_1 = arith.constant 0 : i32
    return %c0_i32, %c0_i32_0 : i32, i32
  }
  func.func @transform_5(%arg0: i32, %arg1: i32) -> (i32, i32, i32) {
    %c0_i32 = arith.constant 0 : i32
    %c0_i32_0 = arith.constant 0 : i32
    return %arg0, %c0_i32, %arg1 : i32, i32, i32
  }
}

</mosaic_0001>

<bundles_post_ra>
// kernel: msc_layer_forward.1
= control target key start
LH: loop header
LB: loop body
LE: loop exit
PB: predicated region body
PF: predicated region fallthrough
CT: control target
= control target key end

     0   :  { %s853_s18 = smov 0   ;;  %s855_s19 = smov 0   ;;  %s944_s0 = inlined_call_operand.vmem [shape: f32[2,1,8,256], index: 0, kind: input, shape index: {}]   ;;  %s945_s1 = inlined_call_operand.vmem [shape: f32[24,64], index: 1, kind: input, shape index: {}]   ;;  %s946_s2 = inlined_call_operand.vmem [shape: f32[24,1], index: 2, kind: input, shape index: {}]   ;;  %s947_s3 = inlined_call_operand.vmem [shape: f32[24,24], index: 3, kind: input, shape index: {}]   ;;  %s948_s4 = inlined_call_operand.vmem [shape: f32[24,1], index: 4, kind: input, shape index: {}]   ;;  %s949_s5 = inlined_call_operand.vmem [shape: f32[2,24,128], index: 5, kind: output, shape index: {}]  }
   0x1   :  { %s857_s20 = smov 0  }
   0x2 LB: > { %s27_s21 = sadd.s32 1, %s806_s19  ;;  %p630_p0 = scmp.ge.s32.totalorder %s810_s20, 1  ;;  %s810_s20 = sphi %s857_s20, %s15_s20   ;;  %s806_s19 = sphi %s855_s19, %s951_s19   ;;  %s802_s18 = sphi %s853_s18, %s950_s18  }
   0x3   : > { %p29_p1 = scmp.ge.s32.totalorder %s27_s21, 2  ;;  %p207_p2 = scmp.lt.s32.totalorder %s810_s20, 3 }
   0x5   : > { %s953_s21 = smov (%p29_p1, %s27_s21), 0  ;;  %p208_p3 = pnand %p630_p0, %p207_p2 }
   0x6   : > { %p242_p4 = scmp.lt.s32.totalorder (!%p208_p3), %s802_s18, 1  ;;  %v812_v0 = vmov (!%p208_p3), 0.0|0.0   ;;  %s813_s26 = smov (!%p208_p3), 127   ;;  %vm817_vm0 = vmmov (!%p208_p3), 0   ;;  %v818_v4 = vmov (!%p208_p3), 0.0   ;;  %v315_v5 = vld [vmem:[%s946_s2] sm:$0xff] (!%p208_p3) }
   0x7   : > { %211 = sbr.rel (%p208_p3) target bundleno = 605 (0x25d), region = 40  ;;  %700 = vmatprep.subr.bf16.mxu0 (!%p208_p3), %v812_v0  ;;  %712 = vmatprep.subr.bf16.mxu1 (!%p208_p3), %v812_v0  ;;  %s814_s27 = smov (!%p208_p3), 125   ;;  %v822_v6 = vmov (!%p208_p3), 0   ;;  %v316_v7 = vld [vmem:[%s946_s2 + $0x8] sm:$0xff] (!%p208_p3)  ;;  %v317_v8 = vld [vmem:[%s946_s2 + $0x10] sm:$0xff] (!%p208_p3)  ;;  %v429_v10 = vld [vmem:[%s948_s4] sm:$0xff] (!%p208_p3) }
   0x8   : > { %s815_s28 = smov (!%p208_p3), 126   ;;  %s816_s29 = smov (!%p208_p3), 124   ;;  %676 = vmatprep.mubr.msk.f32.mxu0 (!%p208_p3), %vm817_vm0, %v818_v4  ;;  %691 = vmatprep.mubr.msk.f32.mxu1 (!%p208_p3), %vm817_vm0, %v818_v4  ;;  %v430_v9 = vld [vmem:[%s948_s4 + $0x8] sm:$0xff] (!%p208_p3)  ;;  %v431_v11 = vld [vmem:[%s948_s4 + $0x10] sm:$0xff] (!%p208_p3)  ;;  %vm267_vm1 = vcmask (!%p208_p3), 1039360   ;;  %vm281_vm2 = vcmask (!%p208_p3), 1022976  }
   0x9   : > { %s819_s30 = smov (!%p208_p3), 123   ;;  %s820_s6 = smov (!%p208_p3), 122   ;;  %786 = vset.pattern.permute.xlu1 (!%p208_p3), %v822_v6  ;;  %787 = vset.pattern.permute.xlu0 (!%p208_p3), %v822_v6  ;;  %vm274_vm3 = vcmask (!%p208_p3), 1031168   ;;  %vm288_vm4 = vcmask (!%p208_p3), 1014784   ;;  %vm295_vm5 = vcmask (!%p208_p3), 1006592   ;;  %vm302_vm6 = vcmask (!%p208_p3), 998400  }
   0xa   : > { %s821_s7 = smov (!%p208_p3), 121   ;;  %vm309_vm7 = vcmask (!%p208_p3), 990208   ;;  %v312_v44 = vld [vmem:[%s945_s1] sm:$0xff] (!%p208_p3)  ;;  %vm333_vm8 = vcmask (!%p208_p3), 523264   ;;  %v313_v45 = vld [vmem:[%s945_s1 + $0x8] sm:$0xff] (!%p208_p3)  ;;  %v314_v46 = vld [vmem:[%s945_s1 + $0x10] sm:$0xff] (!%p208_p3) }
   0xb   : > { %v426_v63 = vld [vmem:[%s947_s3] sm:$0xff] (!%p208_p3)  ;;  %vm447_vm9 = vcmask (!%p208_p3), 195584  }
   0xe   : > { %s955_s18 = smov (!%p242_p4, %s802_s18), 1 }
   0xf   : > { %s642_s22 = sshll.u32 %s955_s18, 4  ;;  %s715_s11 = smul.u32 24, %s955_s18 }
  0x10   : > { %s250_s25 = scalar_lea.vmem %s944_s0, %s642_s22 }
  0x11   : > { %v259_v1 = vld [vmem:[%s250_s25] sm:$0xff]  ;;  %v260_v2 = vld [vmem:[%s250_s25 + $0x8] sm:$0xff]  ;;  %s258_s14 = scalar_lea.vmem %s949_s5, %s715_s11 }
  0x12   : > { %v751_v3 = vpack.i.bf16 %v260_v2, %v259_v1 }
  0x14   : > { %752 = vrot.lane.b32.xlu0 %v751_v3, %s813_s26  ;;  %762 = vrot.lane.b32.xlu1 %v751_v3, %s814_s27 }
  0x18   : > { %757 = vrot.lane.b32.xlu0 %v751_v3, %s815_s28  ;;  %767 = vrot.lane.b32.xlu1 %v751_v3, %s816_s29 }
  0x1c   : > { %772 = vrot.lane.b32.xlu0 %v751_v3, %s819_s30  ;;  %777 = vrot.lane.b32.xlu1 %v751_v3, %s820_s6 }
  0x20   : > { %782 = vrot.lane.b32.xlu0 %v751_v3, %s821_s7  ;;  %320 = vperm.xlu1 %786, %v315_v5  }
  0x24   : > { %325 = vperm.xlu0 %787, %v316_v7   ;;  %330 = vperm.xlu1 %786, %v317_v8  }
  0x28   : > { %439 = vperm.xlu0 %787, %v430_v9   ;;  %434 = vperm.xlu1 %786, %v429_v10  }
  0x2c   : > { %444 = vperm.xlu1 %786, %v431_v11  }
  0x86   : > { %v753_v12 = vpop.permute.xlu0 %752  ;;  %v763_v13 = vpop.permute.xlu1 %762 }
  0x87   : > { %v755_v14 = vunpack.i.h.bf16 %v753_v12  ;;  %v754_v15 = vunpack.i.l.bf16 %v753_v12  ;;  %v765_v16 = vunpack.i.h.bf16 %v763_v13  ;;  %v764_v17 = vunpack.i.l.bf16 %v763_v13 }
  0x89   : > { %v268_v18 = vsel %vm267_vm1, %v754_v15, %v755_v14  ;;  %v282_v22 = vsel %vm281_vm2, %v764_v17, %v765_v16 }
  0x8a   : > { %v758_v19 = vpop.permute.xlu0 %757  ;;  %v701_v20 = vpack.c.bf16 %v268_v18, %v259_v1  ;;  %v768_v21 = vpop.permute.xlu1 %767  ;;  %v428_v1 = vld [vmem:[%s947_s3 + $0x10] sm:$0xff] }
  0x8b   : > { %v760_v23 = vunpack.i.h.bf16 %v758_v19  ;;  %v759_v24 = vunpack.i.l.bf16 %v758_v19  ;;  %v770_v25 = vunpack.i.h.bf16 %v768_v21  ;;  %v769_v26 = vunpack.i.l.bf16 %v768_v21 }
  0x8c   : > { %702 = vmatpush3.bf16.msra.mxu0 %v701_v20 }
  0x8d   : > { %703 = vmatprep.subr.bf16.mxu0 %v812_v0  ;;  %v275_v27 = vsel %vm274_vm3, %v759_v24, %v760_v23  ;;  %v289_v31 = vsel %vm288_vm4, %v769_v26, %v770_v25 }
  0x8e   : > { %v773_v28 = vpop.permute.xlu0 %772  ;;  %v704_v29 = vpack.c.bf16 %v282_v22, %v275_v27  ;;  %v778_v30 = vpop.permute.xlu1 %777 }
  0x8f   : > { %v775_v32 = vunpack.i.h.bf16 %v773_v28  ;;  %v774_v33 = vunpack.i.l.bf16 %v773_v28  ;;  %v780_v34 = vunpack.i.h.bf16 %v778_v30  ;;  %v779_v35 = vunpack.i.l.bf16 %v778_v30 }
  0x90   : > { %705 = vmatpush3.bf16.msra.mxu0 %v704_v29 }
  0x91   : > { %706 = vmatprep.subr.bf16.mxu0 %v812_v0  ;;  %v296_v36 = vsel %vm295_vm5, %v774_v33, %v775_v32  ;;  %v303_v41 = vsel %vm302_vm6, %v779_v35, %v780_v34 }
  0x92   : > { %v783_v37 = vpop.permute.xlu0 %782  ;;  %v707_v38 = vpack.c.bf16 %v296_v36, %v289_v31 }
  0x93   : > { %v785_v39 = vunpack.i.h.bf16 %v783_v37  ;;  %v784_v40 = vunpack.i.l.bf16 %v783_v37 }
  0x94   : > { %708 = vmatpush3.bf16.msra.mxu0 %v707_v38 }
  0x95   : > { %709 = vmatprep.subr.bf16.mxu0 %v812_v0  ;;  %v310_v42 = vsel %vm309_vm7, %v784_v40, %v785_v39  ;;  %v427_v0 = vld [vmem:[%s947_s3 + $0x8] sm:$0xff] }
  0x96   : > { %v710_v43 = vpack.c.bf16 %v310_v42, %v303_v41 }
  0x98   : > { %711 = vmatpush3.bf16.msra.mxu0 %v710_v43 }
  0x9b   : > { %677 = vmatmul.mubr.msk.f32.vlgmr.msra.gmra.mrb[0].mxu0 %vm333_vm8, %v312_v44 }
  0x9c   : > { %679 = vmatprep.mubr.msk.f32.mxu0 %vm817_vm0, %v818_v4 }
  0x9f   : > { %680 = vmatmul.mubr.msk.f32.gmra.mrb[2].mxu0 %vm333_vm8, %v313_v45  ;;  %v321_v49 = vpop.permute.xlu1 %320 }
  0xa0   : > { %682 = vmatprep.mubr.msk.f32.mxu0 %vm817_vm0, %v818_v4 }
  0xa3   : > { %683 = vmatmul.mubr.msk.f32.gmra.mrb[4].mxu0 %vm333_vm8, %v314_v46  ;;  %v326_v51 = vpop.permute.xlu0 %325  ;;  %v331_v57 = vpop.permute.xlu1 %330 }
  0xa7   : > { %v435_v2 = vpop.permute.xlu1 %434  ;;  %v440_v7 = vpop.permute.xlu0 %439 }
 0x16e   : > { %v409_v47 = vpop.f32.mrb[0].mxu0 }
 0x16f   : > { %v678_v48 = vpop.f32.mrb[1].mxu0  ;;  %v410_v50 = vadd.f32 %v409_v47, %v321_v49 }
 0x171   : > { %v423_v55 = vmax.f32 %v410_v50, 0.0 }
 0x172   : > { %v414_v52 = vpop.f32.mrb[2].mxu0 }
 0x173   : > { %v415_v53 = vadd.f32 %v414_v52, %v326_v51  ;;  %v681_v54 = vpop.f32.mrb[3].mxu0 }
 0x175   : > { %v424_v56 = vmax.f32 %v415_v53, 0.0 }
 0x176   : > { %v419_v58 = vpop.f32.mrb[4].mxu0 }
 0x177   : > { %v420_v59 = vadd.f32 %v419_v58, %v331_v57  ;;  %v684_v60 = vpop.f32.mrb[5].mxu0  ;;  %v713_v61 = vpack.c.bf16 %v424_v56, %v423_v55 }
 0x179   : > { %714 = vmatpush3.bf16.msra.mxu1 %v713_v61  ;;  %v425_v62 = vmax.f32 %v420_v59, 0.0 }
 0x17a   : > { %689 = vmatprep.subr.mxu1 %v818_v4 }
 0x17d   : > { %690 = vmatpush3.msra.mxu1 %v425_v62 }
 0x17e   : > { %692 = vmatmul.mubr.msk.f32.vlgmr.msra.gmra.mrb[0].mxu1 %vm447_vm9, %v426_v63 }
 0x17f   : > { %694 = vmatprep.mubr.msk.f32.mxu1 %vm817_vm0, %v818_v4 }
 0x182   : > { %695 = vmatmul.mubr.msk.f32.gmra.mrb[2].mxu1 %vm447_vm9, %v427_v0 }
 0x183   : > { %697 = vmatprep.mubr.msk.f32.mxu1 %vm817_vm0, %v818_v4  ;;  %v445_v4 = vpop.permute.xlu1 %444 }
 0x186   : > { %698 = vmatmul.mubr.msk.f32.gmra.mrb[4].mxu1 %vm447_vm9, %v428_v1 }
 0x251   : > { %v523_v3 = vpop.f32.mrb[0].mxu1 }
 0x252   : > { %v524_v5 = vadd.f32 %v523_v3, %v435_v2  ;;  %v693_v6 = vpop.f32.mrb[1].mxu1 }
 0x254   : > { %537 = vst [vmem:[%s258_s14] sm:$0xff] %v524_v5 }
 0x255   : > { %v528_v8 = vpop.f32.mrb[2].mxu1 }
 0x256   : > { %v529_v9 = vadd.f32 %v528_v8, %v440_v7  ;;  %v696_v10 = vpop.f32.mrb[3].mxu1 }
 0x258   : > { %538 = vst [vmem:[%s258_s14 + $0x8] sm:$0xff] %v529_v9 }
 0x259   : > { %v533_v11 = vpop.f32.mrb[4].mxu1 }
 0x25a   : > { %v534_v12 = vadd.f32 %v533_v11, %v445_v4  ;;  %v699_v13 = vpop.f32.mrb[5].mxu1 }
 0x25c   : > { %539 = vst [vmem:[%s258_s14 + $0x10] sm:$0xff] %v534_v12 }
 0x25d PF: > { %s15_s20 = sadd.s32 1, %s810_s20   ;;  %s950_s18 = smov %s806_s19 }
 0x25e   : > { %p12_p5 = scmp.ge.s32.totalorder %s15_s20, 4   ;;  %s951_s19 = smov %s953_s21 }
 0x260   :  { %14 = sbr.rel (!%p12_p5) target bundleno = 2 (0x2), region = 70 }

</bundles_post_ra>
